<compile_context>
chip_gen: v6e
topology: v6e:2x2x1
jax: 0.10.0
libtpu: 0.0.40
codegen_flags: <defaults>
</compile_context>

<pallas_src>
import functools

import jax
import jax.numpy as jnp
from jax import lax
from jax.experimental import pallas as pl
from jax.experimental.pallas import tpu as pltpu

width_mult_list = [0.5, 1.0]
_EPS = 1e-5
_MIB = 1024 * 1024


def _vmem_budgets():
    """Generation-aware (scoped VMEM limit, per-step tile budget, fused threshold)."""
    try:
        vmem_cap = int(pltpu.get_tpu_info().vmem_capacity_bytes)
    except Exception:  # no hardware info available -> conservative (v7x) numbers
        vmem_cap = 64 * _MIB
    vmem_limit = min(int(vmem_cap * 0.75), 112 * _MIB)  # 48 MiB on v7x, 96 MiB on v5e/v6e
    tile_budget = max(vmem_limit // 6, 2 * _MIB)        # 8 MiB on v7x, 16 MiB on v5e/v6e
    fused_budget = vmem_limit // 5                      # f32-equivalent resident-x cutoff
    return vmem_limit, tile_budget, fused_budget


def _sublane(dtype):
    # Sublane tile: 8 for f32, 16 for bf16, 32 for int8/fp8.
    return max(8, 32 // max(jnp.dtype(dtype).itemsize, 1))


def _pick_tile(total, max_size, align):
    """Largest tile that divides `total`, is a multiple of `align` (or equals `total`),
    and fits in `max_size` when possible."""
    if total <= max_size:
        return total
    aligned = [d for d in range(align, total, align) if total % d == 0]
    fitting = [d for d in aligned if d <= max_size]
    if fitting:
        return max(fitting)
    # Nothing aligned fits: smallest aligned divisor (scoped VMEM limit is the
    # backstop) or the full extent if no aligned divisor exists.
    return min(aligned) if aligned else total


def _plan_stats_tiles(n, c, hw, itemsize, budget_bytes, sublane):
    """(tn, tc, thw) for the (N, C, HW) stats pass; all exact divisors of their axes."""
    # Split channels in two when cleanly sublane-aligned: gives the stats pass a
    # leading 'parallel' grid axis that megacore (v7x) can shard. Harmless on 1-TC
    # chips because tn/thw grow to refill the same byte budget.
    tc = c // 2 if (c % (2 * sublane) == 0) else c
    row_bytes = tc * hw * itemsize
    if row_bytes <= budget_bytes:
        thw = hw
        tn = _pick_tile(n, budget_bytes // row_bytes, 1)
    else:
        tn = 1
        thw = _pick_tile(hw, max(budget_bytes // (tc * itemsize), 1), 128)
        if tc * thw * itemsize > budget_bytes:
            # Very wide channel count: shrink the channel tile too.
            tc = _pick_tile(c, max(budget_bytes // (thw * itemsize), 1), sublane)
    return tn, tc, thw


def _plan_apply_tiles(rows, hw, itemsize, budget_bytes, sublane):
    """(tr, thw) for the sublane-dense (N*C, HW) apply pass."""
    row_bytes = hw * itemsize
    if row_bytes * sublane <= budget_bytes:
        thw = hw
        tr = _pick_tile(rows, budget_bytes // row_bytes, sublane)
    else:
        tr = _pick_tile(rows, sublane, sublane)
        thw = _pick_tile(hw, max(budget_bytes // (tr * itemsize), 1), 128)
    return tr, thw


# ----------------------------------------------------------------------------- kernels


def _bn_fused_kernel(x_ref, gamma_ref, beta_ref, o_ref, *, inv_count):
    """Small-activation fast path: x resident in VMEM, stats + affine in one pass."""
    xf = x_ref[...].astype(jnp.float32)                                      # (N, C, HW)
    s = jnp.sum(jnp.sum(xf, axis=2, keepdims=True), axis=0, keepdims=True)   # (1, C, 1)
    sq = jnp.sum(jnp.sum(xf * xf, axis=2, keepdims=True), axis=0, keepdims=True)
    mean = s * inv_count
    var = jnp.maximum(sq * inv_count - mean * mean, 0.0)  # biased variance, clamped >= 0
    a = gamma_ref[...] * lax.rsqrt(var + _EPS)            # (1, C, 1)
    b = beta_ref[...] - mean * a
    o_ref[...] = (xf * a + b).astype(o_ref.dtype)


def _bn_stats_kernel(x_ref, gamma_ref, beta_ref, a_ref, b_ref,
                     sum_ref, sq_ref, *, inv_count):
    """Pass 1: per-channel-tile sum / sumsq over the (batch, HW) reduction axes,
    folded into a = gamma*inv_std, b = beta - mean*a at the last reduction step."""
    ni = pl.program_id(1)
    hwi = pl.program_id(2)

    @pl.when((ni == 0) & (hwi == 0))
    def _():
        sum_ref[...] = jnp.zeros_like(sum_ref)
        sq_ref[...] = jnp.zeros_like(sq_ref)

    xf = x_ref[...].astype(jnp.float32)                    # (TN, TC, THW)
    sum_ref[...] += jnp.sum(jnp.sum(xf, axis=2, keepdims=True), axis=0)
    sq_ref[...] += jnp.sum(jnp.sum(xf * xf, axis=2, keepdims=True), axis=0)

    @pl.when((ni == pl.num_programs(1) - 1) & (hwi == pl.num_programs(2) - 1))
    def _():
        mean = sum_ref[...] * inv_count
        var = jnp.maximum(sq_ref[...] * inv_count - mean * mean, 0.0)
        a = gamma_ref[...] * lax.rsqrt(var + _EPS)
        a_ref[...] = a
        b_ref[...] = beta_ref[...] - mean * a


def _bn_apply_kernel(x_ref, a_ref, b_ref, o_ref):
    """Pass 2: y = x * a + b; a/b are per-row (TR, 1) and broadcast over lanes."""
    o_ref[...] = (x_ref[...] * a_ref[...] + b_ref[...]).astype(o_ref.dtype)


# ----------------------------------------------------------------------------- wrapper


def _batchnorm2d_pallas(x_nchw, gamma, beta, *, force_two_pass=False,
                        tile_budget_bytes=None):
    """Training-mode BatchNorm2d on an NCHW input using batch statistics."""
    n, c, h, w = x_nchw.shape
    hw = h * w
    count = n * hw
    inv_count = 1.0 / count
    itemsize = jnp.dtype(x_nchw.dtype).itemsize
    sublane = _sublane(x_nchw.dtype)
    elems = n * c * hw

    vmem_limit, tile_budget, fused_budget = _vmem_budgets()
    if tile_budget_bytes is not None:
        tile_budget = tile_budget_bytes

    # ---------------- fused fast path: whole activation resident in VMEM (1R + 1W)
    if not force_two_pass and elems * 4 <= fused_budget:
        x3 = x_nchw.reshape(n, c, hw)                       # free reshape, HW on lanes
        gamma3 = gamma.reshape(1, c, 1).astype(jnp.float32)
        beta3 = beta.reshape(1, c, 1).astype(jnp.float32)
        y3 = pl.pallas_call(
            functools.partial(_bn_fused_kernel, inv_count=inv_count),
            grid=(1,),
            in_specs=[pl.BlockSpec((n, c, hw), lambda i: (0, 0, 0)),
                      pl.BlockSpec((1, c, 1), lambda i: (0, 0, 0)),
                      pl.BlockSpec((1, c, 1), lambda i: (0, 0, 0))],
            out_specs=pl.BlockSpec((n, c, hw), lambda i: (0, 0, 0)),
            out_shape=jax.ShapeDtypeStruct((n, c, hw), x_nchw.dtype),
            compiler_params=pltpu.CompilerParams(
                dimension_semantics=("arbitrary",),
                vmem_limit_bytes=vmem_limit),
            cost_estimate=pl.CostEstimate(
                flops=5 * elems, transcendentals=c,
                bytes_accessed=2 * elems * itemsize),
        )(x3, gamma3, beta3)
        return y3.reshape(n, c, h, w)

    # ---------------- general two-pass path (streaming, BlockSpec-pipelined)
    # Pass 1: per-channel statistics -> folded (a, b), shape (C, 1), f32.
    x3 = x_nchw.reshape(n, c, hw)                           # free reshape, HW on lanes
    gamma2 = gamma.reshape(c, 1).astype(jnp.float32)
    beta2 = beta.reshape(c, 1).astype(jnp.float32)

    tn, tc, thw = _plan_stats_tiles(n, c, hw, itemsize, tile_budget, sublane)
    stats_grid = (c // tc, n // tn, hw // thw)
    x_spec = pl.BlockSpec((tn, tc, thw), lambda ci, ni, hwi: (ni, ci, hwi))
    cvec_spec = pl.BlockSpec((tc, 1), lambda ci, ni, hwi: (ci, 0))

    a_scale, b_bias = pl.pallas_call(
        functools.partial(_bn_stats_kernel, inv_count=inv_count),
        grid=stats_grid,
        in_specs=[x_spec, cvec_spec, cvec_spec],
        out_specs=[cvec_spec, cvec_spec],
        out_shape=[jax.ShapeDtypeStruct((c, 1), jnp.float32),
                   jax.ShapeDtypeStruct((c, 1), jnp.float32)],
        scratch_shapes=[pltpu.VMEM((tc, 1), jnp.float32),
                        pltpu.VMEM((tc, 1), jnp.float32)],
        compiler_params=pltpu.CompilerParams(
            dimension_semantics=("parallel", "arbitrary", "arbitrary"),
            vmem_limit_bytes=vmem_limit),
        cost_estimate=pl.CostEstimate(
            flops=3 * elems, transcendentals=c,
            bytes_accessed=elems * itemsize + 4 * c * 4),
    )(x3, gamma2, beta2)

    # Pass 2: y = x*a + b on a sublane-dense (N*C, HW) layout (free reshape from NCHW).
    rows = n * c
    x2 = x_nchw.reshape(rows, hw)
    a_rows = jnp.tile(a_scale, (n, 1))   # (rows, 1): row r uses channel r % C
    b_rows = jnp.tile(b_bias, (n, 1))

    tr, thw2 = _plan_apply_tiles(rows, hw, itemsize, tile_budget, sublane)
    apply_grid = (rows // tr, hw // thw2)
    x2_spec = pl.BlockSpec((tr, thw2), lambda ri, hwi: (ri, hwi))
    ab_spec = pl.BlockSpec((tr, 1), lambda ri, hwi: (ri, 0))

    # TODO(synk): when HW is not a multiple of 128 (e.g. 7x7 late stages) the stores
    # are lane-masked; padding HW in the wrapper would recover lane density at the
    # cost of extra copies.
    y2 = pl.pallas_call(
        _bn_apply_kernel,
        grid=apply_grid,
        in_specs=[x2_spec, ab_spec, ab_spec],
        out_specs=x2_spec,
        out_shape=jax.ShapeDtypeStruct((rows, hw), x_nchw.dtype),
        compiler_params=pltpu.CompilerParams(
            dimension_semantics=("parallel", "parallel"),
            vmem_limit_bytes=vmem_limit),
        cost_estimate=pl.CostEstimate(
            flops=2 * elems, transcendentals=0,
            bytes_accessed=2 * elems * itemsize + 2 * rows * 4),
    )(x2, a_rows, b_rows)

    return y2.reshape(n, c, h, w)


class SwitchableBatchNorm2dPallas:
    """JAX/Pallas port of SwitchableBatchNorm2d.

    Holds one (gamma, beta) pair per entry in num_features_list and dispatches on
    self.width_mult exactly like the PyTorch module; only the selected BN's
    training-mode forward runs, inside the Pallas kernels.
    """

    def __init__(self, num_features_list, key):
        assert len(num_features_list) == len(width_mult_list)
        self.num_features_list = num_features_list
        self.num_features = max(num_features_list)
        self.width_mult = max(width_mult_list)
        self.ignore_model_profiling = True
        # Deterministic (non-trivial) affine params per sub-BN.
        self.params = []
        for nf in num_features_list:
            key, kg, kb = jax.random.split(key, 3)
            gamma = jax.random.normal(kg, (nf,), dtype=jnp.float32) * 0.1 + 1.0
            beta = jax.random.normal(kb, (nf,), dtype=jnp.float32) * 0.1
            self.params.append((gamma, beta))
        # TODO(synk): running_mean/running_var updates (training-time buffer
        # bookkeeping) are not modeled; training-mode forward output does not
        # depend on them.

    def __call__(self, x_nchw):
        idx = width_mult_list.index(self.width_mult)
        gamma, beta = self.params[idx]
        assert x_nchw.shape[1] == self.num_features_list[idx]
        return _batchnorm2d_pallas(x_nchw, gamma, beta)


def _reference_bn(x_nchw, gamma, beta):
    # Pure-JAX reference of training-mode BatchNorm2d (NCHW).
    mean = jnp.mean(x_nchw, axis=(0, 2, 3), keepdims=True)
    var = jnp.mean((x_nchw - mean) ** 2, axis=(0, 2, 3), keepdims=True)
    xh = (x_nchw - mean) / jnp.sqrt(var + _EPS)
    return xh * gamma.reshape(1, -1, 1, 1) + beta.reshape(1, -1, 1, 1)


if __name__ == "__main__":
    key = jax.random.PRNGKey(0)
    key, kx, kp = jax.random.split(key, 3)

    # num_features_list consistent with width_mult_list = [0.5, 1.0]
    num_features_list = [2, 4]
    module = SwitchableBatchNorm2dPallas(num_features_list, kp)

    # Input at the max width: NCHW = (2, 4, 16, 16)
    x = jax.random.normal(kx, (2, 4, 16, 16), dtype=jnp.float32)

    idx = width_mult_list.index(module.width_mult)
    gamma, beta = module.params[idx]
    y_ref = _reference_bn(x, gamma, beta)

    # Default path (small activation -> fused single-pass kernel).
    y = jax.block_until_ready(module(x))
    assert y.shape == x.shape
    assert jnp.allclose(y, y_ref, atol=1e-4, rtol=1e-4), "fused path mismatch"

    # Also exercise the tiled two-pass path with a tiny tile budget so the grid
    # really splits over batch and H*W (validates accumulator + tiling logic).
    y2 = jax.block_until_ready(
        _batchnorm2d_pallas(x, gamma, beta, force_two_pass=True,
                            tile_budget_bytes=2048))
    assert jnp.allclose(y2, y_ref, atol=1e-4, rtol=1e-4), "two-pass path mismatch"

    print("KERNEL_OK")
</pallas_src>

<mosaic_0001>
module attributes {stable_mosaic.version = 11 : i64} {
  func.func @_bn_fused_kernel(%arg0: i32, %arg1: memref<2x4x256xf32, #tpu.memory_space<vmem>>, %arg2: memref<1x4x1xf32, #tpu.memory_space<vmem>>, %arg3: memref<1x4x1xf32, #tpu.memory_space<vmem>>, %arg4: memref<2x4x256xf32, #tpu.memory_space<vmem>>) attributes {dimension_semantics = [#tpu.dimension_semantics<arbitrary>], iteration_bounds = array<i64: 1>, scalar_prefetch = 0 : i64, scratch_operands = 0 : i64, tpu.core_type = #tpu.core_type<tc>, window_params = [{pipeline_mode = #tpu.pipeline_mode<synchronous>, transform_indices = @transform_0, window_bounds = array<i64: 2, 4, 256>}, {pipeline_mode = #tpu.pipeline_mode<synchronous>, transform_indices = @transform_1, window_bounds = array<i64: 1, 4, 1>}, {pipeline_mode = #tpu.pipeline_mode<synchronous>, transform_indices = @transform_2, window_bounds = array<i64: 1, 4, 1>}, {pipeline_mode = #tpu.pipeline_mode<synchronous>, transform_indices = @transform_3, window_bounds = array<i64: 2, 4, 256>}]} {
    %c0 = arith.constant 0 : index
    %c0_0 = arith.constant 0 : index
    %c0_1 = arith.constant 0 : index
    %0 = vector.load %arg1[%c0, %c0_0, %c0_1] : memref<2x4x256xf32, #tpu.memory_space<vmem>>, vector<2x4x256xf32>
    %cst = arith.constant dense<0.000000e+00> : vector<2x4xf32>
    %1 = vector.multi_reduction <add>, %0, %cst [2] : vector<2x4x256xf32> to vector<2x4xf32>
    %2 = vector.shape_cast %1 : vector<2x4xf32> to vector<2x4x1xf32>
    %cst_2 = arith.constant dense<0.000000e+00> : vector<4x1xf32>
    %3 = vector.multi_reduction <add>, %2, %cst_2 [0] : vector<2x4x1xf32> to vector<4x1xf32>
    %4 = vector.shape_cast %3 : vector<4x1xf32> to vector<1x4x1xf32>
    %5 = arith.mulf %0, %0 : vector<2x4x256xf32>
    %cst_3 = arith.constant dense<0.000000e+00> : vector<2x4xf32>
    %6 = vector.multi_reduction <add>, %5, %cst_3 [2] : vector<2x4x256xf32> to vector<2x4xf32>
    %7 = vector.shape_cast %6 : vector<2x4xf32> to vector<2x4x1xf32>
    %cst_4 = arith.constant dense<0.000000e+00> : vector<4x1xf32>
    %8 = vector.multi_reduction <add>, %7, %cst_4 [0] : vector<2x4x1xf32> to vector<4x1xf32>
    %9 = vector.shape_cast %8 : vector<4x1xf32> to vector<1x4x1xf32>
    %cst_5 = arith.constant 0.001953125 : f32
    %10 = vector.broadcast %cst_5 : f32 to vector<1x4x1xf32>
    %11 = arith.mulf %4, %10 : vector<1x4x1xf32>
    %cst_6 = arith.constant 0.001953125 : f32
    %12 = vector.broadcast %cst_6 : f32 to vector<1x4x1xf32>
    %13 = arith.mulf %9, %12 : vector<1x4x1xf32>
    %14 = arith.mulf %11, %11 : vector<1x4x1xf32>
    %15 = arith.subf %13, %14 : vector<1x4x1xf32>
    %cst_7 = arith.constant 0.000000e+00 : f32
    %16 = vector.broadcast %cst_7 : f32 to vector<1x4x1xf32>
    %17 = arith.maximumf %15, %16 : vector<1x4x1xf32>
    %c0_8 = arith.constant 0 : index
    %c0_9 = arith.constant 0 : index
    %c0_10 = arith.constant 0 : index
    %18 = vector.load %arg2[%c0_8, %c0_9, %c0_10] : memref<1x4x1xf32, #tpu.memory_space<vmem>>, vector<1x4x1xf32>
    %cst_11 = arith.constant 9.99999974E-6 : f32
    %19 = vector.broadcast %cst_11 : f32 to vector<1x4x1xf32>
    %20 = arith.addf %17, %19 : vector<1x4x1xf32>
    %21 = math.rsqrt %20 : vector<1x4x1xf32>
    %22 = arith.mulf %18, %21 : vector<1x4x1xf32>
    %c0_12 = arith.constant 0 : index
    %c0_13 = arith.constant 0 : index
    %c0_14 = arith.constant 0 : index
    %23 = vector.load %arg3[%c0_12, %c0_13, %c0_14] : memref<1x4x1xf32, #tpu.memory_space<vmem>>, vector<1x4x1xf32>
    %24 = arith.mulf %11, %22 : vector<1x4x1xf32>
    %25 = arith.subf %23, %24 : vector<1x4x1xf32>
    %26 = vector.broadcast %22 : vector<1x4x1xf32> to vector<2x4x256xf32>
    %27 = arith.mulf %0, %26 : vector<2x4x256xf32>
    %28 = vector.broadcast %25 : vector<1x4x1xf32> to vector<2x4x256xf32>
    %29 = arith.addf %27, %28 : vector<2x4x256xf32>
    %c0_15 = arith.constant 0 : index
    %c0_16 = arith.constant 0 : index
    %c0_17 = arith.constant 0 : index
    %30 = vector.load %arg4[%c0_15, %c0_16, %c0_17] : memref<2x4x256xf32, #tpu.memory_space<vmem>>, vector<2x4x256xf32>
    tpu.vector_store %arg4[%c0_15, %c0_16, %c0_17], %29 {strides = array<i32>} : memref<2x4x256xf32, #tpu.memory_space<vmem>>, vector<2x4x256xf32>,
    return
  }
  func.func @transform_0(%arg0: i32) -> (i32, i32, i32) {
    %c0_i32 = arith.constant 0 : i32
    %c0_i32_0 = arith.constant 0 : i32
    %c0_i32_1 = arith.constant 0 : i32
    %c0_i32_2 = arith.constant 0 : i32
    return %c0_i32, %c0_i32_0, %c0_i32_1 : i32, i32, i32
  }
  func.func @transform_1(%arg0: i32) -> (i32, i32, i32) {
    %c0_i32 = arith.constant 0 : i32
    %c0_i32_0 = arith.constant 0 : i32
    %c0_i32_1 = arith.constant 0 : i32
    %c0_i32_2 = arith.constant 0 : i32
    return %c0_i32, %c0_i32_0, %c0_i32_1 : i32, i32, i32
  }
  func.func @transform_2(%arg0: i32) -> (i32, i32, i32) {
    %c0_i32 = arith.constant 0 : i32
    %c0_i32_0 = arith.constant 0 : i32
    %c0_i32_1 = arith.constant 0 : i32
    %c0_i32_2 = arith.constant 0 : i32
    return %c0_i32, %c0_i32_0, %c0_i32_1 : i32, i32, i32
  }
  func.func @transform_3(%arg0: i32) -> (i32, i32, i32) {
    %c0_i32 = arith.constant 0 : i32
    %c0_i32_0 = arith.constant 0 : i32
    %c0_i32_1 = arith.constant 0 : i32
    %c0_i32_2 = arith.constant 0 : i32
    return %c0_i32, %c0_i32_0, %c0_i32_1 : i32, i32, i32
  }
}

</mosaic_0001>

<bundles_post_ra>
// kernel: tpu_custom_call.1
= control target key start
LH: loop header
LB: loop body
LE: loop exit
PB: predicated region body
PF: predicated region fallthrough
CT: control target
= control target key end

     0   :  { %8 = vsyncpa [#allocation3], 0  ;;  %s259_s0 = inlined_call_operand.hbm [shape: f32[2,4,256], index: 0, kind: input, shape index: {}]   ;;  %s260_s1 = inlined_call_operand.vmem [shape: f32[1,4,1], index: 1, kind: input, shape index: {}]   ;;  %s261_s2 = inlined_call_operand.vmem [shape: f32[1,4,1], index: 2, kind: input, shape index: {}]   ;;  %s262_s3 = inlined_call_operand.hbm [shape: f32[2,4,256], index: 3, kind: output, shape index: {}]  }
   0x1   :  { %9 = vsyncpa [#allocation4], 0  ;;  %s187_s12 = smov [#allocation2]  }
   0x2   :  { %s15_s13 = sshll.u32 %s187_s12, 4  ;;  %s16_s13 = int_to_ptr.vmem [resolvable:$true] %s15_s13 }
   0x3   :  { %s151_s14 = scalar_lea.vmem %s16_s13, 256  ;;  %p156_p1 = scmp.lt.s32.totalorder %s16_s13, %s16_s13 }
   0x4   :  { %p152_p0 = scmp.ne.s32.totalorder %s16_s13, %s151_s14  ;;  %p157_p2 = scmp.lt.s32.totalorder %s151_s14, %s151_s14 }
   0x6   :  { %p158_p3 = por %p157_p2, %p156_p1 }
   0x8   :  { %p159_p4 = pnand %p158_p3, %p152_p0 }
   0xa   :  { %162 = shalt.err (!%p159_p4)
}
   0xb   :  { %s188_s15 = smov 128   ;;  %s189_s16 = smov 8  }
   0xc   :  { %21 = dma.hbm_to_vmem [thread:$0]  %s259_s0, 256, %s16_s13, [#allocation3], %s188_s15, %s188_s15, %s189_s16  }
   0xd   :  { %183 = dma.done.wait [#allocation3], 256  }
   0xe   :  { %184 = vsyncadd [#allocation3], 4294967040  ;;  %vm37_vm0 = vcmask 1043456   ;;  %v219_v0 = vld [vmem:[#allocation2] sm:$0xff]  ;;  %v221_v1 = vld [vmem:[#allocation2 + $0x8] sm:$0xff]  ;;  %v190_v20 = vmov 0   ;;  %v91_v45 = vlaneseq }
   0xf   :  { %v33_v2 = vcombine.high %v219_v0, %v219_v0  ;;  %v38_v3 = vsel %vm37_vm0, %v219_v0, 0.0  ;;  %v51_v4 = vmul.f32 %v219_v0, %v219_v0  ;;  %v34_v5 = vcombine.high %v221_v1, %v221_v1  ;;  %137 = vset.pattern.permute.xlu0 %v190_v20  ;;  %138 = vset.pattern.permute.xlu1 %v190_v20  ;;  %v77_v37 = vld [vmem:[%s260_s1] sm:$0xf]  ;;  %s192_s1 = smov [#allocation5]  }
  0x10   :  { %v43_v6 = vsel %vm37_vm0, %v221_v1, 0.0  ;;  %v52_v7 = vmul.f32 %v221_v1, %v221_v1  ;;  %v81_v40 = vld [vmem:[%s261_s2] sm:$0xf]  ;;  %v191_v43 = vmov 839922192   ;;  %v92_v47 = vshrl.u32 %v91_v45, 7 }
  0x11   :  { %v39_v8 = vsel %vm37_vm0, %v33_v2, 0.0  ;;  %v55_v9 = vcombine.high %v51_v4, %v51_v4  ;;  %v59_v10 = vsel %vm37_vm0, %v51_v4, 0.0  ;;  %v44_v11 = vsel %vm37_vm0, %v34_v5, 0.0  ;;  %s119_s22 = sshll.u32 %s192_s1, 4  ;;  %s120_s22 = int_to_ptr.vmem [resolvable:$true] %s119_s22 }
  0x12   :  { %v40_v12 = vadd.f32 %v39_v8, %v38_v3  ;;  %v56_v13 = vcombine.high %v52_v7, %v52_v7  ;;  %v64_v15 = vsel %vm37_vm0, %v52_v7, 0.0  ;;  %v45_v17 = vadd.f32 %v44_v11, %v43_v6  ;;  %s163_s2 = scalar_lea.vmem %s120_s22, 256  ;;  %p168_p6 = scmp.lt.s32.totalorder %s120_s22, %s120_s22 }
  0x13   :  { %v60_v14 = vsel %vm37_vm0, %v55_v9, 0.0  ;;  %v89_v44 = vunpack.c.l.s4 %v191_v43  ;;  %p164_p5 = scmp.ne.s32.totalorder %s120_s22, %s163_s2  ;;  %p169_p7 = scmp.lt.s32.totalorder %s163_s2, %s163_s2 }
  0x14   :  { %41 = vadd.xlane.f32.xlu0 %v40_v12  ;;  %v61_v16 = vadd.f32 %v60_v14, %v59_v10  ;;  %v65_v18 = vsel %vm37_vm0, %v56_v13, 0.0 }
  0x15   :  { %v66_v19 = vadd.f32 %v65_v18, %v64_v15  ;;  %v90_v46 = vunpack.c.0.s8 %v89_v44  ;;  %p170_p8 = por %p169_p7, %p168_p6 }
  0x16   :  { %62 = vadd.xlane.f32.xlu1 %v61_v16 }
  0x17   :  { %v93_v48 = vsub.s32 %v90_v46, %v92_v47  ;;  %p171_p9 = pnand %p170_p8, %p164_p5 }
  0x18   :  { %46 = vadd.xlane.f32.xlu0 %v45_v17 }
  0x1a   :  { %67 = vadd.xlane.f32.xlu1 %v66_v19 }
  0x9d   :  { %v42_v21 = vpop.xlane.xlu0 %41 }
  0x9e   :  { %v48_v24 = vsel %vm37_vm0, %v42_v21, 0.0 }
  0x9f   :  { %v63_v22 = vpop.xlane.xlu1 %62 }
  0xa0   :  { %v69_v28 = vsel %vm37_vm0, %v63_v22, 0.0 }
  0xa1   :  { %v47_v23 = vpop.xlane.xlu0 %46 }
  0xa2   :  { %v49_v25 = vsel %vm37_vm0, %v47_v23, 0.0 }
  0xa3   :  { %v50_v26 = vadd.f32 %v49_v25, %v48_v24  ;;  %v68_v27 = vpop.xlane.xlu1 %67 }
  0xa4   :  { %v70_v29 = vsel %vm37_vm0, %v68_v27, 0.0 }
  0xa5   :  { %v72_v30 = vmul.f32 0.001953125, %v50_v26  ;;  %v71_v31 = vadd.f32 %v70_v29, %v69_v28 }
  0xa7   :  { %v74_v32 = vmul.f32 %v72_v30, %v72_v30  ;;  %v73_v33 = vmul.f32 0.001953125, %v71_v31 }
  0xa9   :  { %v75_v34 = vsub.f32 %v73_v33, %v74_v32 }
  0xab   :  { %v76_v35 = vmax.f32 %v75_v34, 0.0 }
  0xad   :  { %v78_v36 = vadd.f32 1e-05, %v76_v35 }
  0xaf   :  { %141 = vrsqrt.f32 %v78_v36 }
  0xbc   :  { %v142_v38 = vpop.eup %141 }
  0xbd   :  { %v80_v39 = vmul.f32 %v142_v38, %v77_v37 }
  0xbf   :  { %86 = vperm.xlu0 %137, %v80_v39   ;;  %v82_v41 = vmul.f32 %v80_v39, %v72_v30 }
  0xc1   :  { %v83_v42 = vsub.f32 %v81_v40, %v82_v41 }
  0xc3   :  { %100 = vperm.xlu1 %138, %v83_v42  }
 0x13a   :  { %v87_v49 = vpop.permute.xlu0 %86 }
 0x13b   :  { %v94_v50 = vrot.slane %v87_v49, %v93_v48 }
 0x13d   :  { %v96_v52 = vmul.f32 %v94_v50, %v219_v0  ;;  %v97_v53 = vmul.f32 %v94_v50, %v221_v1 }
 0x13e   :  { %v101_v51 = vpop.permute.xlu1 %100 }
 0x13f   :  { %v108_v54 = vrot.slane %v101_v51, %v93_v48 }
 0x141   :  { %v110_v55 = vadd.f32 %v108_v54, %v96_v52  ;;  %v111_v56 = vadd.f32 %v108_v54, %v97_v53 }
 0x143   :  { %112 = vst [vmem:[#allocation5] sm:$0xff] %v110_v55  ;;  %113 = vst [vmem:[#allocation5 + $0x8] sm:$0xff] %v111_v56 }
 0x144   :  { %174 = shalt.err (!%p171_p9)
}
 0x145   :  { %125 = dma.vmem_to_hbm [thread:$0]  %s120_s22, 256, %s262_s3, [#allocation4], %s188_s15, %s188_s15, %s189_s16  }
 0x146   :  { %185 = dma.done.wait [#allocation4], 256  }
 0x147   :  { %186 = vsyncadd [#allocation4], 4294967040 }
 0x148   :  { %129 = vsyncpa [#allocation3], 1 }
 0x149   :  { %130 = vsyncpa [#allocation4], 1 }

</bundles_post_ra>
